<compile_context>
chip_gen: v6e
topology: v6e:2x2x1
jax: 0.10.0
libtpu: 0.0.40
codegen_flags: <defaults>
</compile_context>

<pallas_src>
import functools

import jax
import jax.numpy as jnp
from jax.experimental import pallas as pl
from jax.experimental.pallas import tpu as pltpu

EPS = 1e-5


def conv_stats_kernel(a_ref, w_ref, y_ref, stats_ref):
    # a_ref: (TM, Kp) bf16    w_ref: (Kp, OC) bf16 (VMEM-resident across tiles)
    # y_ref: (TM, OC) bf16 unnormalized conv output for this M tile
    # stats_ref: (1, 2, OC) f32 -- row 0 = per-channel sum, row 1 = per-channel sum_sq
    acc = jnp.dot(a_ref[...], w_ref[...], preferred_element_type=jnp.float32)
    y_ref[...] = acc.astype(y_ref.dtype)
    s = jnp.sum(acc, axis=0, keepdims=True)             # (1, OC), f32
    ss = jnp.sum(acc * acc, axis=0, keepdims=True)      # (1, OC), f32
    stats_ref[...] = jnp.concatenate([s, ss], axis=0)[None]


def bn_apply_kernel(y_ref, scale_ref, shift_ref, o_ref):
    # Fused affine: scale/shift already fold mean, var, gamma, beta (all f32 math).
    o_ref[...] = y_ref[...].astype(jnp.float32) * scale_ref[...] + shift_ref[...]


def _round_up(v, m):
    return (v + m - 1) // m * m


@functools.partial(jax.jit, static_argnames=("stride", "padding"))
def conv_batchnorm(x, weight, gamma, beta, stride=2, padding=3):
    N, C, H, W = x.shape
    OC, _, KH, KW = weight.shape
    OH = (H + 2 * padding - KH) // stride + 1
    OW = (W + 2 * padding - KW) // stride + 1

    K = C * KH * KW
    M = N * OH * OW
    Kp = _round_up(K, 32)          # full-dim block: no need to pad lanes to 128

    # Tile rows: large tiles amortize per-step pipeline overhead, but cap at ceil(M/2)
    # so the "parallel" M axis always splits across v7x's two TensorCores.
    M8 = _round_up(M, 8)
    TM = min(2048, M8)
    if M8 >= 16:
        TM = min(TM, _round_up((M8 + 1) // 2, 8))
    Mp = _round_up(M, TM)
    num_tiles = Mp // TM

    # ---- im2col (wrapper-side, bf16)  [see TODO(synk) above] ----
    xp = jnp.pad(x, ((0, 0), (0, 0), (padding, padding), (padding, padding)))
    cols = []
    for kh in range(KH):
        for kw in range(KW):
            cols.append(
                xp[:, :, kh:kh + stride * (OH - 1) + 1:stride,
                          kw:kw + stride * (OW - 1) + 1:stride])
    patches = jnp.stack(cols, axis=0).reshape(KH, KW, N, C, OH, OW)
    patches = jnp.transpose(patches, (2, 4, 5, 3, 0, 1))     # (N, OH, OW, C, KH, KW)

    A = patches.reshape(M, K).astype(jnp.bfloat16)
    A = jnp.pad(A, ((0, Mp - M), (0, Kp - K)))               # zero rows/cols: inert in dot & stats

    Wm = weight.reshape(OC, K).T.astype(jnp.bfloat16)        # (K, OC); (c,kh,kw) order matches A
    Wm = jnp.pad(Wm, ((0, Kp - K), (0, 0)))

    # ---- pass 1: conv matmul + per-tile per-channel partial stats ----
    flops1 = 2 * Mp * Kp * OC
    bytes1 = Mp * Kp * 2 + Kp * OC * 2 + Mp * OC * 2 + num_tiles * 2 * OC * 4
    y, stats = pl.pallas_call(
        conv_stats_kernel,
        out_shape=(
            jax.ShapeDtypeStruct((Mp, OC), jnp.bfloat16),
            jax.ShapeDtypeStruct((num_tiles, 2, OC), jnp.float32),
        ),
        grid=(num_tiles,),
        in_specs=[
            pl.BlockSpec((TM, Kp), lambda i: (i, 0)),
            pl.BlockSpec((Kp, OC), lambda i: (0, 0)),        # weights stay VMEM-resident
        ],
        out_specs=(
            pl.BlockSpec((TM, OC), lambda i: (i, 0)),
            pl.BlockSpec((1, 2, OC), lambda i: (i, 0, 0)),
        ),
        compiler_params=pltpu.CompilerParams(dimension_semantics=("parallel",)),
        cost_estimate=pl.CostEstimate(flops=flops1, transcendentals=0,
                                      bytes_accessed=bytes1),
    )(A, Wm)

    # ---- global BatchNorm stats + fused affine (tiny per-channel math, all f32) ----
    ch_sum = jnp.sum(stats[:, 0, :], axis=0)                 # (OC,)
    ch_ssq = jnp.sum(stats[:, 1, :], axis=0)                 # (OC,)
    mean = ch_sum / M                                        # true M: padded rows contributed 0
    var = jnp.maximum(ch_ssq / M - mean * mean, 0.0)         # biased var; clamp cancellation
    inv = jax.lax.rsqrt(var + EPS)
    g = gamma.astype(jnp.float32)
    b = beta.astype(jnp.float32)
    scale = (g * inv).reshape(1, OC)
    shift = (b - mean * g * inv).reshape(1, OC)

    # ---- pass 2: o = y*scale + shift, tiled over M, written at the true (M, OC) ----
    flops2 = 2 * M * OC
    bytes2 = Mp * OC * 2 + M * OC * 4 + 2 * OC * 4
    out = pl.pallas_call(
        bn_apply_kernel,
        out_shape=jax.ShapeDtypeStruct((M, OC), jnp.float32),
        grid=(num_tiles,),
        in_specs=[
            pl.BlockSpec((TM, OC), lambda i: (i, 0)),
            pl.BlockSpec((1, OC), lambda i: (0, 0)),
            pl.BlockSpec((1, OC), lambda i: (0, 0)),
        ],
        out_specs=pl.BlockSpec((TM, OC), lambda i: (i, 0)),
        compiler_params=pltpu.CompilerParams(dimension_semantics=("parallel",)),
        cost_estimate=pl.CostEstimate(flops=flops2, transcendentals=0,
                                      bytes_accessed=bytes2),
    )(y, scale, shift)

    out = out.reshape(N, OH, OW, OC)                         # free reshape (same layout)
    return jnp.transpose(out, (0, 3, 1, 2))                  # module returns NCHW


def _reference(x, weight, gamma, beta, stride=2, padding=3):
    # pure-JAX f32 reference
    y = jax.lax.conv_general_dilated(
        x, weight, window_strides=(stride, stride),
        padding=((padding, padding), (padding, padding)),
        dimension_numbers=("NCHW", "OIHW", "NCHW"))
    mean = jnp.mean(y, axis=(0, 2, 3), keepdims=True)
    var = jnp.mean((y - mean) ** 2, axis=(0, 2, 3), keepdims=True)
    return (y - mean) * jax.lax.rsqrt(var + EPS) * gamma.reshape(1, -1, 1, 1) \
        + beta.reshape(1, -1, 1, 1)


if __name__ == "__main__":
    key = jax.random.PRNGKey(0)
    k_x, k_w = jax.random.split(key)

    N, C_IN, H, W = 2, 3, 16, 16
    OC, KH, KW = 64, 7, 7

    x = jax.random.normal(k_x, (N, C_IN, H, W), dtype=jnp.float32)
    fan_in = C_IN * KH * KW
    weight = jax.random.normal(k_w, (OC, C_IN, KH, KW), dtype=jnp.float32) / jnp.sqrt(fan_in)
    gamma = jnp.ones((OC,), dtype=jnp.float32)   # PyTorch BatchNorm2d default affine init
    beta = jnp.zeros((OC,), dtype=jnp.float32)

    out = conv_batchnorm(x, weight, gamma, beta)
    out = jax.block_until_ready(out)

    ref = _reference(x, weight, gamma, beta)
    assert out.shape == (N, OC, 8, 8), out.shape
    # bf16 matmul operands + bf16 intermediate (f32 accumulate & stats) -> tolerance vs f32 ref
    assert jnp.allclose(out, ref, rtol=3e-2, atol=3e-2), "mismatch vs reference"

    print("KERNEL_OK")
</pallas_src>

<mosaic_0001>
module attributes {stable_mosaic.version = 11 : i64} {
  func.func @conv_stats_kernel(%arg0: i32, %arg1: memref<64x160xbf16, #tpu.memory_space<vmem>>, %arg2: memref<160x64xbf16, #tpu.memory_space<vmem>>, %arg3: memref<64x64xbf16, #tpu.memory_space<vmem>>, %arg4: memref<1x2x64xf32, #tpu.memory_space<vmem>>) attributes {dimension_semantics = [#tpu.dimension_semantics<parallel>], iteration_bounds = array<i64: 2>, scalar_prefetch = 0 : i64, scratch_operands = 0 : i64, tpu.core_type = #tpu.core_type<tc>, window_params = [{transform_indices = @transform_0, window_bounds = array<i64: 64, 160>}, {pipeline_mode = #tpu.pipeline_mode<synchronous>, transform_indices = @transform_1, window_bounds = array<i64: 160, 64>}, {transform_indices = @transform_2, window_bounds = array<i64: 64, 64>}, {transform_indices = @transform_3, window_bounds = array<i64: 1, 2, 64>}]} {
    %c0 = arith.constant 0 : index
    %c0_0 = arith.constant 0 : index
    %0 = vector.load %arg1[%c0, %c0_0] : memref<64x160xbf16, #tpu.memory_space<vmem>>, vector<64x160xbf16>
    %c0_1 = arith.constant 0 : index
    %c0_2 = arith.constant 0 : index
    %1 = vector.load %arg2[%c0_1, %c0_2] : memref<160x64xbf16, #tpu.memory_space<vmem>>, vector<160x64xbf16>
    %cst = arith.constant dense<0.000000e+00> : vector<64x64xf32>
    %2 = tpu.matmul %0, %1, %cst {dimension_numbers = #tpu.dot_dimension_numbers<[1], [0], [0], [1], [0, 0, 1, 1], [], []>} : vector<64x160xbf16>, vector<160x64xbf16>, vector<64x64xf32> -> vector<64x64xf32>
    %3 = arith.truncf %2 : vector<64x64xf32> to vector<64x64xbf16>
    %c0_3 = arith.constant 0 : index
    %c0_4 = arith.constant 0 : index
    %4 = vector.load %arg3[%c0_3, %c0_4] : memref<64x64xbf16, #tpu.memory_space<vmem>>, vector<64x64xbf16>
    tpu.vector_store %arg3[%c0_3, %c0_4], %3 {strides = array<i32>} : memref<64x64xbf16, #tpu.memory_space<vmem>>, vector<64x64xbf16>,
    %cst_5 = arith.constant dense<0.000000e+00> : vector<64xf32>
    %5 = vector.multi_reduction <add>, %2, %cst_5 [0] : vector<64x64xf32> to vector<64xf32>
    %6 = vector.shape_cast %5 : vector<64xf32> to vector<1x64xf32>
    %7 = arith.mulf %2, %2 : vector<64x64xf32>
    %cst_6 = arith.constant dense<0.000000e+00> : vector<64xf32>
    %8 = vector.multi_reduction <add>, %7, %cst_6 [0] : vector<64x64xf32> to vector<64xf32>
    %9 = vector.shape_cast %8 : vector<64xf32> to vector<1x64xf32>
    %10 = tpu.concatenate %6, %9 in 0 : vector<1x64xf32>, vector<1x64xf32> -> vector<2x64xf32>
    %11 = vector.shape_cast %10 : vector<2x64xf32> to vector<1x2x64xf32>
    %c0_7 = arith.constant 0 : index
    %c0_8 = arith.constant 0 : index
    %c0_9 = arith.constant 0 : index
    %12 = vector.load %arg4[%c0_7, %c0_8, %c0_9] : memref<1x2x64xf32, #tpu.memory_space<vmem>>, vector<1x2x64xf32>
    tpu.vector_store %arg4[%c0_7, %c0_8, %c0_9], %11 {strides = array<i32>} : memref<1x2x64xf32, #tpu.memory_space<vmem>>, vector<1x2x64xf32>,
    return
  }
  func.func @transform_0(%arg0: i32) -> (i32, i32) {
    %c0_i32 = arith.constant 0 : i32
    %c0_i32_0 = arith.constant 0 : i32
    return %arg0, %c0_i32 : i32, i32
  }
  func.func @transform_1(%arg0: i32) -> (i32, i32) {
    %c0_i32 = arith.constant 0 : i32
    %c0_i32_0 = arith.constant 0 : i32
    %c0_i32_1 = arith.constant 0 : i32
    return %c0_i32, %c0_i32_0 : i32, i32
  }
  func.func @transform_2(%arg0: i32) -> (i32, i32) {
    %c0_i32 = arith.constant 0 : i32
    %c0_i32_0 = arith.constant 0 : i32
    return %arg0, %c0_i32 : i32, i32
  }
  func.func @transform_3(%arg0: i32) -> (i32, i32, i32) {
    %c0_i32 = arith.constant 0 : i32
    %c0_i32_0 = arith.constant 0 : i32
    %c0_i32_1 = arith.constant 0 : i32
    return %arg0, %c0_i32, %c0_i32_0 : i32, i32, i32
  }
}

module attributes {stable_mosaic.version = 11 : i64} {
  func.func @bn_apply_kernel(%arg0: i32, %arg1: memref<64x64xbf16, #tpu.memory_space<vmem>>, %arg2: memref<1x64xf32, #tpu.memory_space<vmem>>, %arg3: memref<1x64xf32, #tpu.memory_space<vmem>>, %arg4: memref<64x64xf32, #tpu.memory_space<vmem>>) attributes {dimension_semantics = [#tpu.dimension_semantics<parallel>], iteration_bounds = array<i64: 2>, scalar_prefetch = 0 : i64, scratch_operands = 0 : i64, tpu.core_type = #tpu.core_type<tc>, window_params = [{transform_indices = @transform_0, window_bounds = array<i64: 64, 64>}, {pipeline_mode = #tpu.pipeline_mode<synchronous>, transform_indices = @transform_1, window_bounds = array<i64: 1, 64>}, {pipeline_mode = #tpu.pipeline_mode<synchronous>, transform_indices = @transform_2, window_bounds = array<i64: 1, 64>}, {transform_indices = @transform_3, window_bounds = array<i64: 64, 64>}]} {
    %c0 = arith.constant 0 : index
    %c0_0 = arith.constant 0 : index
    %0 = vector.load %arg1[%c0, %c0_0] : memref<64x64xbf16, #tpu.memory_space<vmem>>, vector<64x64xbf16>
    %1 = arith.extf %0 : vector<64x64xbf16> to vector<64x64xf32>
    %c0_1 = arith.constant 0 : index
    %c0_2 = arith.constant 0 : index
    %2 = vector.load %arg2[%c0_1, %c0_2] : memref<1x64xf32, #tpu.memory_space<vmem>>, vector<1x64xf32>
    %3 = vector.broadcast %2 : vector<1x64xf32> to vector<64x64xf32>
    %4 = arith.mulf %1, %3 : vector<64x64xf32>
    %c0_3 = arith.constant 0 : index
    %c0_4 = arith.constant 0 : index
    %5 = vector.load %arg3[%c0_3, %c0_4] : memref<1x64xf32, #tpu.memory_space<vmem>>, vector<1x64xf32>
    %6 = vector.broadcast %5 : vector<1x64xf32> to vector<64x64xf32>
    %7 = arith.addf %4, %6 : vector<64x64xf32>
    %c0_5 = arith.constant 0 : index
    %c0_6 = arith.constant 0 : index
    %8 = vector.load %arg4[%c0_5, %c0_6] : memref<64x64xf32, #tpu.memory_space<vmem>>, vector<64x64xf32>
    tpu.vector_store %arg4[%c0_5, %c0_6], %7 {strides = array<i32>} : memref<64x64xf32, #tpu.memory_space<vmem>>, vector<64x64xf32>,
    return
  }
  func.func @transform_0(%arg0: i32) -> (i32, i32) {
    %c0_i32 = arith.constant 0 : i32
    %c0_i32_0 = arith.constant 0 : i32
    return %arg0, %c0_i32 : i32, i32
  }
  func.func @transform_1(%arg0: i32) -> (i32, i32) {
    %c0_i32 = arith.constant 0 : i32
    %c0_i32_0 = arith.constant 0 : i32
    %c0_i32_1 = arith.constant 0 : i32
    return %c0_i32, %c0_i32_0 : i32, i32
  }
  func.func @transform_2(%arg0: i32) -> (i32, i32) {
    %c0_i32 = arith.constant 0 : i32
    %c0_i32_0 = arith.constant 0 : i32
    %c0_i32_1 = arith.constant 0 : i32
    return %c0_i32, %c0_i32_0 : i32, i32
  }
  func.func @transform_3(%arg0: i32) -> (i32, i32) {
    %c0_i32 = arith.constant 0 : i32
    %c0_i32_0 = arith.constant 0 : i32
    return %arg0, %c0_i32 : i32, i32
  }
}

</mosaic_0001>

<bundles_post_ra>
// kernel: conv_batchnorm.2
= control target key start
LH: loop header
LB: loop body
LE: loop exit
PB: predicated region body
PF: predicated region fallthrough
CT: control target
= control target key end

     0   :  { %s706_s12 = smov 0   ;;  %s813_s0 = inlined_call_operand.vmem [shape: bf16[128,160], index: 0, kind: input, shape index: {}]   ;;  %s814_s1 = inlined_call_operand.vmem [shape: bf16[160,64], index: 1, kind: input, shape index: {}]   ;;  %s815_s2 = inlined_call_operand.vmem [shape: bf16[128,64], index: 2, kind: output, shape index: {0}]   ;;  %s816_s3 = inlined_call_operand.vmem [shape: f32[2,2,64], index: 3, kind: output, shape index: {1}]  }
   0x1 LB: > { %s712_s13 = sadd.s32 4294967295, %s683_s12   ;;  %p578_p0 = scmp.ge.s32.totalorder %s683_s12, 1  ;;  %s683_s12 = sphi %s706_s12, %s14_s12  }
   0x2   : > { %p142_p1 = scmp.lt.s32.totalorder %s683_s12, 3 }
   0x4   : > { %p143_p2 = pnand %p578_p0, %p142_p1 }
   0x5   : > { %s579_s16 = sshll.u32 (!%p143_p2), %s712_s13, 3  ;;  %p184_p4 = scmp.lt.s32.totalorder (!%p143_p2), %s712_s13, 1 }
   0x6   : > { %146 = sbr.rel (%p143_p2) target bundleno = 284 (0x11c), region = 28  ;;  %p172_p3 = scmp.lt.s32.totalorder (!%p143_p2), %s579_s16, 15 }
   0xb   : > { %v655_v0 = vld [vmem:[%s814_s1 + $0x38] sm:$0xff]   ;;  %v685_v1 = vmov 0   ;;  %v656_v2 = vld [vmem:[%s814_s1 + $0x30] sm:$0xff]   ;;  %s818_s16 = smov (!%p172_p3, %s579_s16), 15  ;;  %v657_v3 = vld [vmem:[%s814_s1 + $0x28] sm:$0xff]   ;;  %vm313_vm0 = vcmask 261120  }
   0xc   : > { %326 = vmatprep.subr.bf16.mxu0 %v685_v1  ;;  %626 = vmatprep.subr.bf16.mxu1 %v685_v1  ;;  %s617_s21 = sshll.u32 %s818_s16, 3  ;;  %v658_v4 = vld [vmem:[%s814_s1 + $0x20] sm:$0xff]   ;;  %v659_v7 = vld [vmem:[%s814_s1 + $0x18] sm:$0xff]   ;;  %v660_v8 = vld [vmem:[%s814_s1 + $0x10] sm:$0xff]   ;;  %s583_s14 = sshll.u32 %s818_s16, 2  ;;  %vm423_vm1 = vcmask 519168  }
   0xd   : > { %327 = vmatpush1.bf16.msra.mxu0 %v655_v0  ;;  %636 = vmatpush1.bf16.msra.mxu1 %v655_v0  ;;  %s732_s24 = scalar_lea.vmem %s813_s0, %s617_s21  ;;  %v661_v9 = vld [vmem:[%s814_s1 + $0x8] sm:$0xff]   ;;  %v662_v10 = vld [vmem:[%s814_s1] sm:$0xff]   ;;  %s771_s18 = scalar_lea.vmem %s815_s2, %s583_s14  ;;  %vm432_vm2 = vcmask 523264   ;;  %vm483_vm3 = vcmask 1040384   ;;  %vm485_vm4 = vcmask 517120  }
   0xe   : > { %328 = vmatprep.subr.bf16.mxu0 %v685_v1  ;;  %627 = vmatprep.subr.bf16.mxu1 %v685_v1  ;;  %v667_v5 = vld [vmem:[%s732_s24 + $0x4] ss:$8 sps:$4 sm:$0xff]   ;;  %v665_v13 = vld [vmem:[%s732_s24] ss:$8 sps:$4 sm:$0xff]   ;;  %v671_v15 = vld [vmem:[%s732_s24 + $0x14] ss:$8 sps:$4 sm:$0xff]  }
   0xf   : > { %v670_v6 = vld [vmem:[%s732_s24 + $0x24] ss:$8 sps:$4 sm:$0xff]   ;;  %603 = vmatprep.mubr.msk.bf16.mxu0 %vm313_vm0, %v667_v5  ;;  %v668_v14 = vld [vmem:[%s732_s24 + $0x20] ss:$8 sps:$4 sm:$0xff]   ;;  %v674_v16 = vld [vmem:[%s732_s24 + $0x34] ss:$8 sps:$4 sm:$0xff]  }
  0x10   : > { %605 = vmatprep.mubr.msk.bf16.mxu1 %vm313_vm0, %v670_v6  ;;  %v663_v11 = vld [vmem:[%s814_s1 + $0x48] sm:$0xff]   ;;  %v664_v12 = vld [vmem:[%s814_s1 + $0x40] sm:$0xff]   ;;  %v673_v17 = vld [vmem:[%s732_s24 + $0x10] ss:$8 sps:$4 sm:$0xff]   ;;  %s820_s13 = smov (!%p184_p4, %s712_s13), 1 }
  0x11   : > { %329 = vmatpush1.bf16.msra.mxu0 %v656_v2  ;;  %637 = vmatpush1.bf16.msra.mxu1 %v656_v2  ;;  %v676_v18 = vld [vmem:[%s732_s24 + $0x30] ss:$8 sps:$4 sm:$0xff]   ;;  %s584_s16 = sshll.u32 %s820_s13, 1 }
  0x12   : > { %330 = vmatprep.subr.bf16.mxu0 %v685_v1  ;;  %628 = vmatprep.subr.bf16.mxu1 %v685_v1  ;;  %s187_s21 = scalar_lea.vmem %s816_s3, %s584_s16 }
  0x15   : > { %331 = vmatpush1.bf16.msra.mxu0 %v657_v3  ;;  %638 = vmatpush1.bf16.msra.mxu1 %v657_v3 }
  0x16   : > { %332 = vmatprep.subr.bf16.mxu0 %v685_v1  ;;  %629 = vmatprep.subr.bf16.mxu1 %v685_v1 }
  0x19   : > { %333 = vmatpush1.bf16.msra.mxu0 %v658_v4  ;;  %639 = vmatpush1.bf16.msra.mxu1 %v658_v4 }
  0x1a   : > { %334 = vmatprep.subr.bf16.mxu0 %v685_v1  ;;  %630 = vmatprep.subr.bf16.mxu1 %v685_v1 }
  0x1d   : > { %335 = vmatpush1.bf16.msra.mxu0 %v659_v7  ;;  %640 = vmatpush1.bf16.msra.mxu1 %v659_v7 }
  0x1e   : > { %336 = vmatprep.subr.bf16.mxu0 %v685_v1  ;;  %631 = vmatprep.subr.bf16.mxu1 %v685_v1 }
  0x21   : > { %337 = vmatpush1.bf16.msra.mxu0 %v660_v8  ;;  %641 = vmatpush1.bf16.msra.mxu1 %v660_v8 }
  0x22   : > { %338 = vmatprep.subr.bf16.mxu0 %v685_v1  ;;  %632 = vmatprep.subr.bf16.mxu1 %v685_v1 }
  0x25   : > { %339 = vmatpush1.bf16.msra.mxu0 %v661_v9  ;;  %642 = vmatpush1.bf16.msra.mxu1 %v661_v9 }
  0x26   : > { %340 = vmatprep.subr.bf16.mxu0 %v685_v1  ;;  %633 = vmatprep.subr.bf16.mxu1 %v685_v1 }
  0x29   : > { %341 = vmatpush1.bf16.msra.mxu0 %v662_v10  ;;  %643 = vmatpush1.bf16.msra.mxu1 %v662_v10 }
  0x2a   : > { %354 = vmatprep.subr.bf16.mxu0 %v685_v1  ;;  %634 = vmatprep.subr.bf16.mxu1 %v685_v1 }
  0x2d   : > { %355 = vmatpush2.bf16.msra.mxu0 %v663_v11  ;;  %644 = vmatpush2.bf16.msra.mxu1 %v663_v11 }
  0x2e   : > { %356 = vmatprep.subr.bf16.mxu0 %v685_v1  ;;  %635 = vmatprep.subr.bf16.mxu1 %v685_v1 }
  0x31   : > { %357 = vmatpush2.bf16.msra.mxu0 %v664_v12  ;;  %645 = vmatpush2.bf16.msra.mxu1 %v664_v12 }
  0x34   : > { %359 = vmatmul.mubr.bf16.vlgmr.msra.gmra.mxu0 %v665_v13  ;;  %375 = vmatmul.mubr.bf16.vlgmr.msra.gmra.mxu1 %v668_v14 }
  0x35   : > { %604 = vmatprep.mubr.msk.bf16.mxu0 %vm313_vm0, %v671_v15  ;;  %606 = vmatprep.mubr.msk.bf16.mxu1 %vm313_vm0, %v674_v16 }
  0x3c   : > { %367 = vmatmul.mubr.bf16.gmra.mxu0 %v673_v17  ;;  %383 = vmatmul.mubr.bf16.gmra.mxu1 %v676_v18 }
  0xf4   : > { %v360_v19 = vpop.f32.mrf.mxu0  ;;  %v376_v20 = vpop.f32.mrf.mxu1 }
  0xf5   : > { %v618_v21 = vpack.c.bf16 %v360_v19, %v360_v19  ;;  %v622_v22 = vpack.c.bf16 %v376_v20, %v376_v20  ;;  %v454_v32 = vmul.f32 %v360_v19, %v360_v19  ;;  %v433_v34 = vsel %vm432_vm2, %v360_v19, 0.0 }
  0xf6   : > { %v362_v23 = vpop.f32.mrf.mxu0  ;;  %v378_v24 = vpop.f32.mrf.mxu1  ;;  %v458_v47 = vmul.f32 %v376_v20, %v376_v20  ;;  %v440_v60 = vsel %vm432_vm2, %v376_v20, 0.0 }
  0xf7   : > { %424 = vst.msk [vmem:[%s771_s18] sm:$0xf] %vm423_vm1, %v618_v21  ;;  %428 = vst.msk [vmem:[%s771_s18 + $0x10] sm:$0xf] %vm423_vm1, %v622_v22  ;;  %v462_v45 = vsel %vm432_vm2, %v454_v32, 0.0 }
  0xf8   : > { %v363_v25 = vpop.f32.mrf.mxu0  ;;  %v379_v26 = vpop.f32.mrf.mxu1  ;;  %v469_v1 = vsel %vm432_vm2, %v458_v47, 0.0 }
  0xf9   : > { %v619_v27 = vpack.c.bf16 %v363_v25, %v363_v25  ;;  %v455_v28 = vmul.f32 %v363_v25, %v363_v25  ;;  %v623_v29 = vpack.c.bf16 %v379_v26, %v379_v26  ;;  %v434_v33 = vsel %vm432_vm2, %v363_v25, 0.0 }
  0xfa   : > { %v365_v30 = vpop.f32.mrf.mxu0  ;;  %v381_v31 = vpop.f32.mrf.mxu1  ;;  %v435_v42 = vadd.f32 %v434_v33, %v433_v34  ;;  %v459_v61 = vmul.f32 %v379_v26, %v379_v26  ;;  %v442_v2 = vsel %vm432_vm2, %v379_v26, 0.0 }
  0xfb   : > { %425 = vst.msk [vmem:[%s771_s18 + $0x4] sm:$0xf] %vm423_vm1, %v619_v27  ;;  %429 = vst.msk [vmem:[%s771_s18 + $0x14] sm:$0xf] %vm423_vm1, %v623_v29  ;;  %v463_v35 = vsel %vm432_vm2, %v455_v28, 0.0 }
  0xfc   : > { %v368_v36 = vpop.f32.mrf.mxu0  ;;  %v384_v37 = vpop.f32.mrf.mxu1  ;;  %v464_v48 = vadd.f32 %v463_v35, %v462_v45  ;;  %v471_v6 = vsel %vm432_vm2, %v459_v61, 0.0 }
  0xfd   : > { %v620_v38 = vpack.c.bf16 %v368_v36, %v368_v36  ;;  %v436_v39 = vsel %vm432_vm2, %v368_v36, 0.0  ;;  %v456_v40 = vmul.f32 %v368_v36, %v368_v36  ;;  %v624_v41 = vpack.c.bf16 %v384_v37, %v384_v37 }
  0xfe   : > { %v370_v43 = vpop.f32.mrf.mxu0  ;;  %v386_v44 = vpop.f32.mrf.mxu1  ;;  %v437_v49 = vadd.f32 %v436_v39, %v435_v42  ;;  %v460_v3 = vmul.f32 %v384_v37, %v384_v37  ;;  %v444_v7 = vsel %vm432_vm2, %v384_v37, 0.0 }
  0xff   : > { %426 = vst.msk [vmem:[%s771_s18 + $0x8] sm:$0xf] %vm423_vm1, %v620_v38  ;;  %v465_v46 = vsel %vm432_vm2, %v456_v40, 0.0  ;;  %430 = vst.msk [vmem:[%s771_s18 + $0x18] sm:$0xf] %vm423_vm1, %v624_v41 }
 0x100   : > { %v371_v50 = vpop.f32.mrf.mxu0  ;;  %v387_v51 = vpop.f32.mrf.mxu1  ;;  %v466_v56 = vadd.f32 %v465_v46, %v464_v48  ;;  %v473_v11 = vsel %vm432_vm2, %v460_v3, 0.0 }
 0x101   : > { %v621_v52 = vpack.c.bf16 %v371_v50, %v371_v50  ;;  %v438_v53 = vsel %vm432_vm2, %v371_v50, 0.0  ;;  %v457_v54 = vmul.f32 %v371_v50, %v371_v50  ;;  %v625_v55 = vpack.c.bf16 %v387_v51, %v387_v51 }
 0x102   : > { %v439_v57 = vadd.f32 %v438_v53, %v437_v49  ;;  %v373_v58 = vpop.f32.mrf.mxu0  ;;  %v389_v59 = vpop.f32.mrf.mxu1  ;;  %v461_v8 = vmul.f32 %v387_v51, %v387_v51  ;;  %v446_v12 = vsel %vm432_vm2, %v387_v51, 0.0 }
 0x103   : > { %427 = vst.msk [vmem:[%s771_s18 + $0xc] sm:$0xf] %vm423_vm1, %v621_v52  ;;  %v467_v62 = vsel %vm432_vm2, %v457_v54, 0.0  ;;  %431 = vst.msk [vmem:[%s771_s18 + $0x1c] sm:$0xf] %vm423_vm1, %v625_v55 }
 0x104   : > { %v441_v63 = vadd.f32 %v440_v60, %v439_v57  ;;  %v468_v0 = vadd.f32 %v467_v62, %v466_v56  ;;  %v475_v15 = vsel %vm432_vm2, %v461_v8, 0.0 }
 0x106   : > { %v470_v4 = vadd.f32 %v469_v1, %v468_v0  ;;  %v443_v5 = vadd.f32 %v442_v2, %v441_v63 }
 0x108   : > { %v445_v9 = vadd.f32 %v444_v7, %v443_v5  ;;  %v472_v10 = vadd.f32 %v471_v6, %v470_v4 }
 0x10a   : > { %v447_v13 = vadd.f32 %v446_v12, %v445_v9  ;;  %v474_v14 = vadd.f32 %v473_v11, %v472_v10 }
 0x10c   : > { %v448_v16 = vrot.slane %v447_v13, 4  ;;  %v476_v17 = vadd.f32 %v475_v15, %v474_v14 }
 0x10e   : > { %v449_v18 = vadd.f32 %v448_v16, %v447_v13  ;;  %v477_v19 = vrot.slane %v476_v17, 4 }
 0x110   : > { %v450_v20 = vrot.slane %v449_v18, 2  ;;  %v478_v21 = vadd.f32 %v477_v19, %v476_v17 }
 0x112   : > { %v451_v22 = vadd.f32 %v450_v20, %v449_v18  ;;  %v479_v23 = vrot.slane %v478_v21, 2 }
 0x114   : > { %v452_v24 = vrot.slane %v451_v22, 1  ;;  %v480_v25 = vadd.f32 %v479_v23, %v478_v21 }
 0x116   : > { %v481_v26 = vrot.slane %v480_v25, 1  ;;  %v453_v27 = vadd.f32 %v452_v24, %v451_v22 }
 0x118   : > { %v482_v28 = vadd.f32 %v481_v26, %v480_v25 }
 0x11a   : > { %v484_v29 = vsel %vm483_vm3, %v453_v27, %v482_v28 }
 0x11b   : > { %486 = vst.msk [vmem:[%s187_s21] sm:$0x3] %vm485_vm4, %v484_v29 }
 0x11c PF: > { %s14_s12 = sadd.s32 1, %s683_s12  }
 0x11d   : > { %p11_p5 = scmp.ge.s32.totalorder %s14_s12, 4  }
 0x11f   :  { %13 = sbr.rel (!%p11_p5) target bundleno = 1 (0x1), region = 70 }

// kernel: conv_batchnorm.3
= control target key start
LH: loop header
LB: loop body
LE: loop exit
PB: predicated region body
PF: predicated region fallthrough
CT: control target
= control target key end

     0   :  { %8 = vsyncpa [#allocation3], 0  ;;  %s593_s0 = inlined_call_operand.vmem [shape: bf16[128,64], index: 0, kind: input, shape index: {}]   ;;  %s594_s1 = inlined_call_operand.vmem [shape: f32[1,64], index: 1, kind: input, shape index: {}]   ;;  %s595_s2 = inlined_call_operand.vmem [shape: f32[1,64], index: 2, kind: input, shape index: {}]   ;;  %s596_s3 = inlined_call_operand.hbm [shape: f32[128,64], index: 3, kind: output, shape index: {}]  }
   0x1   :  { %10 = vsyncpa [#allocation3 + $0x1], 0  ;;  %s463_s12 = smov 0   ;;  %s465_s13 = smov 0  }
   0x2   :  { %s467_s14 = smov 0   ;;  %s469_s15 = smov 0  }
   0x3 LB: > { %s484_s16 = sadd.s32 4294967295, %s438_s15   ;;  %s303_s17 = sadd.s32 4294967294, %s438_s15   ;;  %s438_s15 = sphi %s469_s15, %s602_s15   ;;  %s434_s14 = sphi %s467_s14, %s601_s14   ;;  %s430_s13 = sphi %s465_s13, %s600_s13   ;;  %s426_s12 = sphi %s463_s12, %s599_s12  }
   0x4   : > { %s488_s18 = sadd.s32 1, %s438_s15   ;;  %s91_s19 = sadd.s32 1, %s434_s14 }
   0x5   : > { %s88_s20 = ssub.s32 %s438_s15, %s488_s18  ;;  %p101_p0 = scmp.ne.s32.totalorder %s434_s14, %s430_s13 }
   0x6   : > { %p89_p1 = scmp.eq.s32.totalorder %s88_s20, 0  ;;  %p102_p2 = scmp.eq.s32.totalorder %s484_s16, 1 }
   0x7   : > { %p107_p3 = scmp.ne.s32.totalorder %s430_s13, %s426_s12  ;;  %p108_p4 = scmp.eq.s32.totalorder %s303_s17, 1 }
   0x8   : > { %s499_s21 = scalar_select %p89_p1, %s434_s14, %s91_s19  }
   0x9   : > { %p501_p5 = por %p102_p2, %p101_p0  ;;  %p505_p6 = por %p108_p4, %p107_p3 }
   0xa   : > { %p306_p7 = scmp.ge.s32.totalorder %s438_s15, 1  ;;  %p141_p8 = scmp.lt.s32.totalorder %s438_s15, 3 }
   0xc   : > { %p142_p9 = pnand %p306_p7, %p141_p8 }
   0xd   : > { %s162_s24 = sand.u32 (!%p142_p9), 1, %s430_s13   ;;  %s308_s25 = sshll.u32 (!%p142_p9), %s484_s16, 3 }
   0xe   : > { %145 = sbr.rel (%p142_p9) target bundleno = 46 (0x2e), region = 32  ;;  %p166_p10 = scmp.lt.s32.totalorder (!%p142_p9), %s308_s25, 15 }
   0xf   : > { %s307_s26 = sshll.u32 (!%p142_p9), %s162_s24, 6  ;;  %s317_s10 = sshll.u32 (!%p142_p9), %s484_s16, 10 }
  0x10   : > { %s524_s8 = scalar_lea.vmem (!%p142_p9), [#allocation2], %s307_s26  ;;  %s533_s17 = scalar_lea.hbm (!%p142_p9), %s596_s3, %s317_s10 }
  0x11   : > { %s241_s9 = sshll.u32 (!%p142_p9), %s524_s8, 4  ;;  %s553_s19 = scalar_lea.sflag (!%p142_p9), [#allocation3], %s162_s24  ;;  %s528_s9 = int_to_ptr.vmem [resolvable:$true] %s241_s9 }
  0x12   : > { %s378_s20 = scalar_lea.vmem (!%p142_p9), %s528_s9, 1024 }
  0x13   : > { %s604_s25 = smov (!%p166_p10, %s308_s25), 15  ;;  %v310_v0 = vld [vmem:[%s594_s1] ss:$0 sm:$0xff]  ;;  %vm218_vm0 = vcmask 523264   ;;  %p379_p11 = scmp.ne.s32.totalorder %s528_s9, %s378_s20 }
  0x14   : > { %s309_s27 = sshll.u32 %s604_s25, 2  ;;  %v311_v9 = vld [vmem:[%s595_s2] ss:$0 sm:$0xff]  ;;  %s440_s25 = smov [#allocation2]  }
  0x15   : > { %s169_s30 = scalar_lea.vmem %s593_s0, %s309_s27  ;;  %p380_p12 = pnand %p379_p11, %p501_p5 }
  0x16   : > { %v319_v1 = vld [vmem:[%s169_s30] sm:$0xff]   ;;  %v334_v2 = vld [vmem:[%s169_s30 + $0x8] sm:$0xff]   ;;  %v335_v3 = vld [vmem:[%s169_s30 + $0x10] sm:$0xff]   ;;  %s382_s26 = sshll.u32 %s440_s25, 4  ;;  %s383_s26 = int_to_ptr.vmem [resolvable:$false] %s382_s26 }
  0x17   : > { %v320_v4 = vunpack.c.l.bf16 %v319_v1  ;;  %v321_v5 = vunpack.c.h.bf16 %v319_v1  ;;  %v324_v6 = vunpack.c.l.bf16 %v334_v2  ;;  %v325_v7 = vunpack.c.h.bf16 %v334_v2  ;;  %v336_v8 = vld [vmem:[%s169_s30 + $0x18] sm:$0xff]   ;;  %p381_p13 = pneg %p380_p12  ;;  %s384_s27 = scalar_lea.vmem %s383_s26, 2048 }
  0x18   : > { %v328_v10 = vunpack.c.l.bf16 %v335_v3  ;;  %v329_v11 = vunpack.c.h.bf16 %v335_v3  ;;  %v332_v12 = vunpack.c.l.bf16 %v336_v8  ;;  %v333_v13 = vunpack.c.h.bf16 %v336_v8  ;;  %p385_p0 = scmp.lt.s32.totalorder %s528_s9, %s383_s26  ;;  %p386_p1 = scmp.lt.s32.totalorder %s384_s27, %s378_s20 }
  0x19   : > { %v195_v14 = vmul.f32 %v320_v4, %v310_v0  ;;  %v196_v15 = vmul.f32 %v321_v5, %v310_v0  ;;  %v197_v16 = vmul.f32 %v324_v6, %v310_v0  ;;  %v198_v17 = vmul.f32 %v325_v7, %v310_v0 }
  0x1a   : > { %v199_v18 = vmul.f32 %v328_v10, %v310_v0  ;;  %v200_v19 = vmul.f32 %v329_v11, %v310_v0  ;;  %v201_v20 = vmul.f32 %v332_v12, %v310_v0  ;;  %v202_v21 = vmul.f32 %v333_v13, %v310_v0  ;;  %p387_p2 = por %p386_p1, %p385_p0 }
  0x1b   : > { %v210_v22 = vadd.f32 %v311_v9, %v195_v14  ;;  %v211_v23 = vadd.f32 %v311_v9, %v196_v15  ;;  %v212_v24 = vadd.f32 %v311_v9, %v197_v16  ;;  %v213_v25 = vadd.f32 %v311_v9, %v198_v17 }
  0x1c   : > { %v214_v26 = vadd.f32 %v311_v9, %v199_v18  ;;  %v215_v27 = vadd.f32 %v311_v9, %v200_v19  ;;  %v216_v28 = vadd.f32 %v311_v9, %v201_v20  ;;  %v217_v29 = vadd.f32 %v311_v9, %v202_v21  ;;  %p388_p3 = pnand %p387_p2, %p381_p13 }
  0x1d   : > { %219 = vst.msk [vmem:[%s524_s8] sm:$0xff] %vm218_vm0, %v210_v22  ;;  %220 = vst.msk [vmem:[%s524_s8 + $0x8] sm:$0xff] %vm218_vm0, %v211_v23 }
  0x1e   : > { %221 = vst.msk [vmem:[%s524_s8 + $0x10] sm:$0xff] %vm218_vm0, %v212_v24  ;;  %222 = vst.msk [vmem:[%s524_s8 + $0x18] sm:$0xff] %vm218_vm0, %v213_v25 }
  0x1f   : > { %223 = vst.msk [vmem:[%s524_s8 + $0x20] sm:$0xff] %vm218_vm0, %v214_v26  ;;  %224 = vst.msk [vmem:[%s524_s8 + $0x28] sm:$0xff] %vm218_vm0, %v215_v27 }
  0x20   : > { %225 = vst.msk [vmem:[%s524_s8 + $0x30] sm:$0xff] %vm218_vm0, %v216_v28  ;;  %226 = vst.msk [vmem:[%s524_s8 + $0x38] sm:$0xff] %vm218_vm0, %v217_v29 }
  0x21   : > { %391 = shalt.err (!%p388_p3)
}
  0x22   : > { %s392_s24 = scalar_lea.hbm %s533_s17, 1024  ;;  %s396_s30 = scalar_lea.hbm %s596_s3, 2048 }
  0x23   : > { %p393_p4 = scmp.ne.s32.totalorder %s533_s17, %s392_s24  ;;  %p397_p9 = scmp.lt.s32.totalorder %s533_s17, %s596_s3 }
  0x24   : > { %p398_p10 = scmp.lt.s32.totalorder %s396_s30, %s392_s24 }
  0x25   : > { %p394_p7 = pnand %p393_p4, %p501_p5 }
  0x26   : > { %p399_p11 = por %p398_p10, %p397_p9 }
  0x27   : > { %p395_p8 = pneg %p394_p7 }
  0x29   : > { %p400_p12 = pnand %p399_p11, %p395_p8 }
  0x2b   : > { %403 = shalt.err (!%p400_p12)
}
  0x2c   : > { %s441_s6 = smov 128   ;;  %s442_s7 = smov 8  }
  0x2d   : > { %337 = dma.vmem_to_hbm [thread:$0]  (%p501_p5), %s528_s9, 1024, %s533_s17, %s553_s19, %s441_s6, %s441_s6, %s442_s7  }
  0x2e PF: > { %p343_p13 = scmp.ge.s32.totalorder %s438_s15, 2  ;;  %s256_s8 = sand.u32 1, %s426_s12  }
  0x2f   : > { %s257_s10 = scalar_lea.sflag [#allocation3], %s256_s8 }
  0x30   : > { %p340_p0 = pnand %p343_p13, %p505_p6 }
  0x32   : > { %p341_p1 = pneg %p340_p0 }
  0x34   : > { %421 = dma.done.wait (%p341_p1), %s257_s10, 1024  }
  0x35   : > { %423 = vsyncadd (%p341_p1), %s257_s10, 4294966272  ;;  %p13_p2 = scmp.ge.s32.totalorder %s488_s18, 4   ;;  %s599_s12 = smov %s430_s13 }
  0x36   : > { %s600_s13 = smov %s434_s14  ;;  %s601_s14 = smov %s499_s21 }
  0x37   : > { %s602_s15 = smov %s488_s18  ;;  %15 = sbr.rel (!%p13_p2) target bundleno = 3 (0x3), region = 67 }
  0x3c   :  { %262 = vsyncpa [#allocation3], 1 }
  0x3d   :  { %264 = vsyncpa [#allocation3 + $0x1], 1 }

</bundles_post_ra>
